<compile_context>
chip_gen: v7x
topology: tpu7x:2x2x1
jax: 0.10.0
libtpu: 0.0.40
codegen_flags: <defaults>
</compile_context>

<pallas_src>
import functools

import jax
import jax.numpy as jnp
from jax import lax
from jax.experimental import pallas as pl
from jax.experimental.pallas import tpu as pltpu


def netvlad_kernel(x_ref, w_ref, b_ref, cent_ref, out_ref, agg_sc, asum_sc,
                   *, n_total, block_n, mask_tail):
    # x_ref:    (bt, C, tn)  f32   input features (native NCHW layout, n-sliced)
    # w_ref:    (K, C)       bf16  1x1-conv weight
    # b_ref:    (K, 1)       f32   conv bias
    # cent_ref: (K, C)       f32   cluster centroids
    # out_ref:  (bt, K, C)   f32   per-batch VLAD (written on the last N-step)
    # agg_sc:   (bt, K, C)   f32   accumulator: sum_n a[k,n] * x[c,n]
    # asum_sc:  (bt, K, 1)   f32   accumulator: sum_n a[k,n]
    n_step = pl.program_id(1)
    bt = x_ref.shape[0]

    @pl.when(n_step == 0)
    def _init():
        agg_sc[...] = jnp.zeros_like(agg_sc)
        asum_sc[...] = jnp.zeros_like(asum_sc)

    w = w_ref[...]            # (K, C) bf16 — loaded once, reused for all batches
    b = b_ref[...]            # (K, 1) f32

    if mask_tail:
        # Tail columns of the last N tile are garbage: mask them out of x and
        # of the softmax weights so they contribute exactly zero.
        valid = n_total - n_step * block_n
        col_ok = lax.broadcasted_iota(jnp.int32, (1, block_n), 1) < valid

    # Short static unroll over packed batches: every matmul stays 2-D, the
    # weight tile stays resident and no batched broadcast is materialized.
    for i in range(bt):
        xi = x_ref[i].astype(jnp.bfloat16)            # (C, tn) in-kernel VPU cast
        if mask_tail:
            xi = jnp.where(col_ok, xi, 0)

        # 1x1 conv == (K,C)@(C,tn): logits land lane-dense as (K, tn).
        logits = jnp.dot(w, xi, preferred_element_type=jnp.float32)
        logits = jnp.maximum(logits + b, 0.0)         # bias + ReLU, f32

        # softmax over clusters (sublane reduce over K), f32 elementwise.
        m = jnp.max(logits, axis=0, keepdims=True)
        e = jnp.exp(logits - m)
        a = e * (1.0 / jnp.sum(e, axis=0, keepdims=True))     # (K, tn)
        if mask_tail:
            a = jnp.where(col_ok, a, 0.0)

        # agg[k,c] += sum_n a[k,n]*x[c,n];  asum[k] += sum_n a[k,n].
        # NOTE(perf): both operands contract on their minor (lane) dim; if an
        # MLIR dump shows Mosaic transposing the (C,tn) x tile here, flip to
        # einsum('cn,kn->ck') with a (C,K) scratch so the transpose lands on
        # the small (K,tn) tile instead (one-time flip at finalize).
        agg_sc[i] += jnp.einsum('kn,cn->kc', a.astype(jnp.bfloat16), xi,
                                preferred_element_type=jnp.float32)
        asum_sc[i] += jnp.sum(a, axis=-1, keepdims=True)       # (K, 1)

    @pl.when(n_step == pl.num_programs(1) - 1)
    def _finalize():
        cent = cent_ref[...]                                    # (K, C) f32
        for i in range(bt):
            vlad = agg_sc[i] - asum_sc[i] * cent                # (K, C)
            # intra (per cluster row, over C) + global (over K*C) L2 norms,
            # fused into one elementwise scale; rsqrt runs on the EUP.
            row_sq = jnp.sum(vlad * vlad, axis=-1, keepdims=True)   # (K, 1)
            inv_row = lax.rsqrt(jnp.maximum(row_sq, 1e-24))
            # ||normalized row||^2 = row_sq * inv_row^2  => the global norm
            # follows from the per-row scalars alone (identical to re-reducing
            # the normalized vlad; clamps match the reference's 1e-12 floors).
            g_sq = jnp.sum(row_sq * inv_row * inv_row, axis=0, keepdims=True)
            inv_g = lax.rsqrt(jnp.maximum(g_sq, 1e-24))
            out_ref[i] = vlad * (inv_row * inv_g)               # lane-dense C store


def _vmem_budget():
    """(physical VMEM bytes, working-set budget used for tile selection)."""
    try:
        phys = int(pltpu.get_tpu_info().vmem_capacity_bytes)
    except Exception:
        phys = 64 << 20                      # conservative (v7x-sized) fallback
    # ~1/4 of physical for the double-buffered working set, capped at 32 MiB:
    # v7x (64 MiB) -> 16 MiB, v5e/v6e (128 MiB) -> 32 MiB.
    return phys, min(phys // 4, 32 << 20)


def _vmem_estimate(bt, tn, C, K):
    """Rough per-step VMEM working set (bytes) for bt packed batches, tile tn."""
    x_blk = 2 * bt * C * tn * 4                  # f32 input tile, double-buffered
    out_blk = 2 * bt * K * C * 4                 # f32 output tile, double-buffered
    scratch = bt * K * C * 4 + bt * K * 128 * 4  # agg + (lane-padded) asum
    temps = bt * (C * tn * 2 + 4 * K * tn * 4)   # bf16 x copy + logits/e/a/a_bf16
    consts = 4 * K * C * 4                       # w / bias / centroids (+ margin)
    return x_blk + out_blk + scratch + temps + consts


def _pick_block_n(N, C, K, budget, cap=2048):
    """N tile: full extent if small, else a large 128-multiple (preferring an
    exact divisor of N so no tail masking is needed)."""
    if N <= cap and _vmem_estimate(1, N, C, K) <= budget:
        return N
    tn = min(cap, max(128, (N // 128) * 128))
    while tn > 128 and _vmem_estimate(1, tn, C, K) > budget:
        tn -= 128
    for cand in range(tn, max(tn // 2, 127), -128):   # nearby exact divisor?
        if N % cand == 0:
            return cand
    return tn                                          # cdiv grid + masked tail


def _pick_block_batch(B, C, K, tn, budget):
    """Largest batch divisor whose working set fits the VMEM budget, keeping
    >= 2 grid steps when B allows (v7x has 2 TensorCores on the parallel axis)."""
    divs = [d for d in range(1, B + 1) if B % d == 0]
    fits = [d for d in divs if _vmem_estimate(d, tn, C, K) <= budget]
    if not fits:
        return 1
    bt = max(fits)
    if B // bt < 2:
        two_step = [d for d in fits if B // d >= 2]
        if two_step:
            bt = max(two_step)
    # TODO(synk): for B == 1 on v7x, additionally split the N axis across the
    # two TensorCores (partial agg/asum per half + tiny combine epilogue).
    return bt


def netvlad_forward(x, conv_w, conv_b, centroids):
    """x: (B, C, H, W) float32 (NCHW, as in PyTorch).  Returns (B, K*C) f32."""
    B, C, H, W = x.shape
    N = H * W
    K = centroids.shape[0]

    # Free reshapes only: NCHW -> (B, C, N), kept in f32 (the bf16 cast happens
    # per-tile inside the kernel).  Weight goes in as bf16 for the MXU; bias and
    # centroids stay f32 (they feed VPU elementwise math).
    x_cn = x.reshape(B, C, N)
    w = conv_w.reshape(K, C).astype(jnp.bfloat16)
    bias = conv_b.reshape(K, 1).astype(jnp.float32)
    cent = centroids.astype(jnp.float32)

    phys_vmem, budget = _vmem_budget()
    tn = _pick_block_n(N, C, K, budget)
    bt = _pick_block_batch(B, C, K, tn, budget)
    grid = (B // bt, pl.cdiv(N, tn))            # reduction axis (N) last
    mask_tail = (N % tn) != 0

    kernel = functools.partial(netvlad_kernel, n_total=N, block_n=tn,
                               mask_tail=mask_tail)

    out = pl.pallas_call(
        kernel,
        out_shape=jax.ShapeDtypeStruct((B, K, C), jnp.float32),
        grid_spec=pltpu.PrefetchScalarGridSpec(
            num_scalar_prefetch=0,
            grid=grid,
            in_specs=[
                pl.BlockSpec((bt, C, tn), lambda b, n: (b, 0, n)),
                pl.BlockSpec((K, C), lambda b, n: (0, 0)),
                pl.BlockSpec((K, 1), lambda b, n: (0, 0)),
                pl.BlockSpec((K, C), lambda b, n: (0, 0)),
            ],
            out_specs=pl.BlockSpec((bt, K, C), lambda b, n: (b, 0, 0)),
            scratch_shapes=[
                pltpu.VMEM((bt, K, C), jnp.float32),
                pltpu.VMEM((bt, K, 1), jnp.float32),
            ],
        ),
        compiler_params=pltpu.CompilerParams(
            dimension_semantics=("parallel", "arbitrary"),
            vmem_limit_bytes=int(phys_vmem * 3 // 4)),
    )(x_cn, w, bias, cent)

    return out.reshape(B, K * C)


def netvlad_reference(x, conv_w, conv_b, centroids):
    """Pure-JAX reference mirroring the PyTorch forward exactly (f32)."""
    B, C, H, W = x.shape
    K = centroids.shape[0]
    logits = jnp.einsum('bchw,kc->bkhw', x, conv_w.reshape(K, C)) \
        + conv_b[None, :, None, None]
    sa = jnp.maximum(logits, 0.0)
    sa = jax.nn.softmax(sa, axis=1)
    sa = sa.reshape(B, K, -1)
    xf = x.reshape(B, C, -1)
    x1 = jnp.transpose(xf[:, None, :, :], (0, 1, 3, 2))             # (B,1,N,C)
    res = x1 - centroids[None, :, None, :]                          # (B,K,N,C)
    res = res * sa[..., None]
    vlad = res.sum(axis=-2)                                         # (B,K,C)
    vlad = vlad / jnp.maximum(
        jnp.linalg.norm(vlad, axis=2, keepdims=True), 1e-12)
    vlad = vlad.reshape(B, -1)
    vlad = vlad / jnp.maximum(
        jnp.linalg.norm(vlad, axis=1, keepdims=True), 1e-12)
    return vlad


if __name__ == "__main__":
    fea_size = 128
    num_clusters = 16
    B, H, W = 2, 8, 1  # small spatial extent, W=1 as the module docstring implies

    key = jax.random.PRNGKey(0)
    k_x, k_w, k_b, k_c = jax.random.split(key, 4)

    x = jax.random.normal(k_x, (B, fea_size, H, W), dtype=jnp.float32)
    conv_w = jax.random.normal(
        k_w, (num_clusters, fea_size, 1, 1), dtype=jnp.float32) * 0.05
    conv_b = jax.random.normal(k_b, (num_clusters,), dtype=jnp.float32) * 0.05
    centroids = jax.random.normal(
        k_c, (num_clusters, fea_size), dtype=jnp.float32)

    out = jax.block_until_ready(netvlad_forward(x, conv_w, conv_b, centroids))
    ref = jax.block_until_ready(
        netvlad_reference(x, conv_w, conv_b, centroids))

    assert out.shape == (B, num_clusters * fea_size)
    # Tolerance loosened vs. a pure-f32 implementation because both MXU matmuls
    # take bf16 inputs (f32 accumulation); observed error is ~1e-3.
    assert jnp.allclose(out, ref, atol=5e-3, rtol=5e-2), \
        f"max abs err {jnp.max(jnp.abs(out - ref))}"

    print("KERNEL_OK")
</pallas_src>

<mosaic_0001>
module attributes {stable_mosaic.version = 11 : i64} {
  func.func @netvlad_kernel(%arg0: i32, %arg1: i32, %arg2: memref<1x128x8xf32, #tpu.memory_space<vmem>>, %arg3: memref<16x128xbf16, #tpu.memory_space<vmem>>, %arg4: memref<16x1xf32, #tpu.memory_space<vmem>>, %arg5: memref<16x128xf32, #tpu.memory_space<vmem>>, %arg6: memref<1x16x128xf32, #tpu.memory_space<vmem>>, %arg7: memref<1x16x128xf32, #tpu.memory_space<vmem>>, %arg8: memref<1x16x1xf32, #tpu.memory_space<vmem>>) attributes {dimension_semantics = [#tpu.dimension_semantics<parallel>, #tpu.dimension_semantics<arbitrary>], iteration_bounds = array<i64: 2, 1>, scalar_prefetch = 0 : i64, scratch_operands = 2 : i64, tpu.core_type = #tpu.core_type<tc>, window_params = [{transform_indices = @transform_0, window_bounds = array<i64: 1, 128, 8>}, {pipeline_mode = #tpu.pipeline_mode<synchronous>, transform_indices = @transform_1, window_bounds = array<i64: 16, 128>}, {pipeline_mode = #tpu.pipeline_mode<synchronous>, transform_indices = @transform_2, window_bounds = array<i64: 16, 1>}, {pipeline_mode = #tpu.pipeline_mode<synchronous>, transform_indices = @transform_3, window_bounds = array<i64: 16, 128>}, {transform_indices = @transform_4, window_bounds = array<i64: 1, 16, 128>}]} {
    %c0_i32 = arith.constant 0 : i32
    %0 = arith.cmpi eq, %arg1, %c0_i32 : i32
    %1 = arith.extui %0 : i1 to i32
    %c0_i32_0 = arith.constant 0 : i32
    %2 = arith.cmpi ne, %1, %c0_i32_0 : i32
    scf.if %2 {
      %cst_27 = arith.constant 0.000000e+00 : f32
      %43 = vector.broadcast %cst_27 : f32 to vector<1x16x128xf32>
      %c0_28 = arith.constant 0 : index
      %c0_29 = arith.constant 0 : index
      %c0_30 = arith.constant 0 : index
      %44 = vector.load %arg7[%c0_28, %c0_29, %c0_30] : memref<1x16x128xf32, #tpu.memory_space<vmem>>, vector<1x16x128xf32>
      tpu.vector_store %arg7[%c0_28, %c0_29, %c0_30], %43 {strides = array<i32>} : memref<1x16x128xf32, #tpu.memory_space<vmem>>, vector<1x16x128xf32>,
      %cst_31 = arith.constant 0.000000e+00 : f32
      %45 = vector.broadcast %cst_31 : f32 to vector<1x16x1xf32>
      %c0_32 = arith.constant 0 : index
      %c0_33 = arith.constant 0 : index
      %c0_34 = arith.constant 0 : index
      %46 = vector.load %arg8[%c0_32, %c0_33, %c0_34] : memref<1x16x1xf32, #tpu.memory_space<vmem>>, vector<1x16x1xf32>
      tpu.vector_store %arg8[%c0_32, %c0_33, %c0_34], %45 {strides = array<i32>} : memref<1x16x1xf32, #tpu.memory_space<vmem>>, vector<1x16x1xf32>,
    } else {
    }
    %c0 = arith.constant 0 : index
    %c0_1 = arith.constant 0 : index
    %3 = vector.load %arg3[%c0, %c0_1] : memref<16x128xbf16, #tpu.memory_space<vmem>>, vector<16x128xbf16>
    %c0_2 = arith.constant 0 : index
    %c0_3 = arith.constant 0 : index
    %4 = vector.load %arg4[%c0_2, %c0_3] : memref<16x1xf32, #tpu.memory_space<vmem>>, vector<16x1xf32>
    %c0_4 = arith.constant 0 : index
    %c0_5 = arith.constant 0 : index
    %c0_6 = arith.constant 0 : index
    %5 = vector.load %arg2[%c0_4, %c0_5, %c0_6] : memref<1x128x8xf32, #tpu.memory_space<vmem>>, vector<1x128x8xf32>
    %6 = vector.shape_cast %5 : vector<1x128x8xf32> to vector<128x8xf32>
    %7 = arith.truncf %6 : vector<128x8xf32> to vector<128x8xbf16>
    %cst = arith.constant dense<0.000000e+00> : vector<16x8xf32>
    %8 = tpu.matmul %3, %7, %cst {dimension_numbers = #tpu.dot_dimension_numbers<[1], [0], [0], [1], [0, 0, 1, 1], [], []>} : vector<16x128xbf16>, vector<128x8xbf16>, vector<16x8xf32> -> vector<16x8xf32>
    %9 = vector.broadcast %4 : vector<16x1xf32> to vector<16x8xf32>
    %10 = arith.addf %8, %9 : vector<16x8xf32>
    %cst_7 = arith.constant 0.000000e+00 : f32
    %11 = vector.broadcast %cst_7 : f32 to vector<16x8xf32>
    %12 = arith.maximumf %10, %11 : vector<16x8xf32>
    %cst_8 = arith.constant dense<0xFF800000> : vector<8xf32>
    %13 = vector.multi_reduction <maximumf>, %12, %cst_8 [0] : vector<16x8xf32> to vector<8xf32>
    %14 = vector.shape_cast %13 : vector<8xf32> to vector<1x8xf32>
    %15 = vector.broadcast %14 : vector<1x8xf32> to vector<16x8xf32>
    %16 = arith.subf %12, %15 : vector<16x8xf32>
    %17 = math.exp %16 : vector<16x8xf32>
    %cst_9 = arith.constant dense<0.000000e+00> : vector<8xf32>
    %18 = vector.multi_reduction <add>, %17, %cst_9 [0] : vector<16x8xf32> to vector<8xf32>
    %19 = vector.shape_cast %18 : vector<8xf32> to vector<1x8xf32>
    %cst_10 = arith.constant 1.000000e+00 : f32
    %20 = vector.broadcast %cst_10 : f32 to vector<1x8xf32>
    %21 = arith.divf %20, %19 : vector<1x8xf32>
    %22 = vector.broadcast %21 : vector<1x8xf32> to vector<16x8xf32>
    %23 = arith.mulf %17, %22 : vector<16x8xf32>
    %c0_11 = arith.constant 0 : index
    %c0_12 = arith.constant 0 : index
    %c0_13 = arith.constant 0 : index
    %24 = vector.load %arg7[%c0_11, %c0_12, %c0_13] : memref<1x16x128xf32, #tpu.memory_space<vmem>>, vector<1x16x128xf32>
    %25 = vector.shape_cast %24 : vector<1x16x128xf32> to vector<16x128xf32>
    %26 = arith.truncf %23 : vector<16x8xf32> to vector<16x8xbf16>
    "tpu.trace_start"() <{level = 10 : i32, message = "kn,cn->kc"}> : () -> ()
    %cst_14 = arith.constant dense<0.000000e+00> : vector<16x128xf32>
    %27 = tpu.matmul %26, %7, %cst_14 {dimension_numbers = #tpu.dot_dimension_numbers<[1], [1], [0], [0], [0, 0, 1, 0], [], []>} : vector<16x8xbf16>, vector<128x8xbf16>, vector<16x128xf32> -> vector<16x128xf32>
    "tpu.trace_stop"() : () -> ()
    %28 = arith.addf %25, %27 : vector<16x128xf32>
    %c0_15 = arith.constant 0 : index
    %c0_16 = arith.constant 0 : index
    %c0_17 = arith.constant 0 : index
    %29 = vector.load %arg7[%c0_15, %c0_16, %c0_17] : memref<1x16x128xf32, #tpu.memory_space<vmem>>, vector<1x16x128xf32>
    %30 = vector.shape_cast %29 : vector<1x16x128xf32> to vector<16x128xf32>
    %31 = vector.shape_cast %28 : vector<16x128xf32> to vector<1x16x128xf32>
    tpu.vector_store %arg7[%c0_15, %c0_16, %c0_17], %31 {strides = array<i32>} : memref<1x16x128xf32, #tpu.memory_space<vmem>>, vector<1x16x128xf32>,
    %c0_18 = arith.constant 0 : index
    %c0_19 = arith.constant 0 : index
    %c0_20 = arith.constant 0 : index
    %32 = vector.load %arg8[%c0_18, %c0_19, %c0_20] : memref<1x16x1xf32, #tpu.memory_space<vmem>>, vector<1x16x1xf32>
    %33 = vector.shape_cast %32 : vector<1x16x1xf32> to vector<16x1xf32>
    %cst_21 = arith.constant dense<0.000000e+00> : vector<16xf32>
    %34 = vector.multi_reduction <add>, %23, %cst_21 [1] : vector<16x8xf32> to vector<16xf32>
    %35 = vector.shape_cast %34 : vector<16xf32> to vector<16x1xf32>
    %36 = arith.addf %33, %35 : vector<16x1xf32>
    %c0_22 = arith.constant 0 : index
    %c0_23 = arith.constant 0 : index
    %c0_24 = arith.constant 0 : index
    %37 = vector.load %arg8[%c0_22, %c0_23, %c0_24] : memref<1x16x1xf32, #tpu.memory_space<vmem>>, vector<1x16x1xf32>
    %38 = vector.shape_cast %37 : vector<1x16x1xf32> to vector<16x1xf32>
    %39 = vector.shape_cast %36 : vector<16x1xf32> to vector<1x16x1xf32>
    tpu.vector_store %arg8[%c0_22, %c0_23, %c0_24], %39 {strides = array<i32>} : memref<1x16x1xf32, #tpu.memory_space<vmem>>, vector<1x16x1xf32>,
    %c0_i32_25 = arith.constant 0 : i32
    %40 = arith.cmpi eq, %arg1, %c0_i32_25 : i32
    %41 = arith.extui %40 : i1 to i32
    %c0_i32_26 = arith.constant 0 : i32
    %42 = arith.cmpi ne, %41, %c0_i32_26 : i32
    scf.if %42 {
      %c0_27 = arith.constant 0 : index
      %c0_28 = arith.constant 0 : index
      %43 = vector.load %arg5[%c0_27, %c0_28] : memref<16x128xf32, #tpu.memory_space<vmem>>, vector<16x128xf32>
      %c0_29 = arith.constant 0 : index
      %c0_30 = arith.constant 0 : index
      %c0_31 = arith.constant 0 : index
      %44 = vector.load %arg7[%c0_29, %c0_30, %c0_31] : memref<1x16x128xf32, #tpu.memory_space<vmem>>, vector<1x16x128xf32>
      %45 = vector.shape_cast %44 : vector<1x16x128xf32> to vector<16x128xf32>
      %c0_32 = arith.constant 0 : index
      %c0_33 = arith.constant 0 : index
      %c0_34 = arith.constant 0 : index
      %46 = vector.load %arg8[%c0_32, %c0_33, %c0_34] : memref<1x16x1xf32, #tpu.memory_space<vmem>>, vector<1x16x1xf32>
      %47 = vector.shape_cast %46 : vector<1x16x1xf32> to vector<16x1xf32>
      %48 = vector.broadcast %47 : vector<16x1xf32> to vector<16x128xf32>
      %49 = arith.mulf %48, %43 : vector<16x128xf32>
      %50 = arith.subf %45, %49 : vector<16x128xf32>
      %51 = arith.mulf %50, %50 : vector<16x128xf32>
      %cst_35 = arith.constant dense<0.000000e+00> : vector<16xf32>
      %52 = vector.multi_reduction <add>, %51, %cst_35 [1] : vector<16x128xf32> to vector<16xf32>
      %53 = vector.shape_cast %52 : vector<16xf32> to vector<16x1xf32>
      %cst_36 = arith.constant 1.000000e-24 : f32
      %54 = vector.broadcast %cst_36 : f32 to vector<16x1xf32>
      %55 = arith.maximumf %53, %54 : vector<16x1xf32>
      %56 = math.rsqrt %55 : vector<16x1xf32>
      %57 = arith.mulf %53, %56 : vector<16x1xf32>
      %58 = arith.mulf %57, %56 : vector<16x1xf32>
      %cst_37 = arith.constant dense<0.000000e+00> : vector<1xf32>
      %59 = vector.multi_reduction <add>, %58, %cst_37 [0] : vector<16x1xf32> to vector<1xf32>
      %60 = vector.shape_cast %59 : vector<1xf32> to vector<1x1xf32>
      %cst_38 = arith.constant 1.000000e-24 : f32
      %61 = vector.broadcast %cst_38 : f32 to vector<1x1xf32>
      %62 = arith.maximumf %60, %61 : vector<1x1xf32>
      %63 = math.rsqrt %62 : vector<1x1xf32>
      %64 = vector.broadcast %63 : vector<1x1xf32> to vector<16x1xf32>
      %65 = arith.mulf %56, %64 : vector<16x1xf32>
      %66 = vector.broadcast %65 : vector<16x1xf32> to vector<16x128xf32>
      %67 = arith.mulf %50, %66 : vector<16x128xf32>
      %c0_39 = arith.constant 0 : index
      %c0_40 = arith.constant 0 : index
      %c0_41 = arith.constant 0 : index
      %68 = vector.load %arg6[%c0_39, %c0_40, %c0_41] : memref<1x16x128xf32, #tpu.memory_space<vmem>>, vector<1x16x128xf32>
      %69 = vector.shape_cast %68 : vector<1x16x128xf32> to vector<16x128xf32>
      %70 = vector.shape_cast %67 : vector<16x128xf32> to vector<1x16x128xf32>
      tpu.vector_store %arg6[%c0_39, %c0_40, %c0_41], %70 {strides = array<i32>} : memref<1x16x128xf32, #tpu.memory_space<vmem>>, vector<1x16x128xf32>,
    } else {
    }
    return
  }
  func.func @transform_0(%arg0: i32, %arg1: i32) -> (i32, i32, i32) {
    %c0_i32 = arith.constant 0 : i32
    %c0_i32_0 = arith.constant 0 : i32
    return %arg0, %c0_i32, %arg1 : i32, i32, i32
  }
  func.func @transform_1(%arg0: i32, %arg1: i32) -> (i32, i32) {
    %c0_i32 = arith.constant 0 : i32
    %c0_i32_0 = arith.constant 0 : i32
    %c0_i32_1 = arith.constant 0 : i32
    return %c0_i32, %c0_i32_0 : i32, i32
  }
  func.func @transform_2(%arg0: i32, %arg1: i32) -> (i32, i32) {
    %c0_i32 = arith.constant 0 : i32
    %c0_i32_0 = arith.constant 0 : i32
    %c0_i32_1 = arith.constant 0 : i32
    return %c0_i32, %c0_i32_0 : i32, i32
  }
  func.func @transform_3(%arg0: i32, %arg1: i32) -> (i32, i32) {
    %c0_i32 = arith.constant 0 : i32
    %c0_i32_0 = arith.constant 0 : i32
    %c0_i32_1 = arith.constant 0 : i32
    return %c0_i32, %c0_i32_0 : i32, i32
  }
  func.func @transform_4(%arg0: i32, %arg1: i32) -> (i32, i32, i32) {
    %c0_i32 = arith.constant 0 : i32
    %c0_i32_0 = arith.constant 0 : i32
    %c0_i32_1 = arith.constant 0 : i32
    return %arg0, %c0_i32, %c0_i32_0 : i32, i32, i32
  }
}

</mosaic_0001>

<bundles_post_ra>
// kernel: tpu_custom_call.1
= control target key start
LH: loop header
LB: loop body
LE: loop exit
PB: predicated region body
PF: predicated region fallthrough
CT: control target
= control target key end

     0   :  { %9 = vsyncpa [#allocation5], 0  ;;  %s1023_s0 = inlined_call_operand.vmem [shape: f32[2,128,8], index: 0, kind: input, shape index: {}]   ;;  %s1024_s1 = inlined_call_operand.vmem [shape: bf16[16,128], index: 1, kind: input, shape index: {}]   ;;  %s1025_s2 = inlined_call_operand.vmem [shape: f32[16,1], index: 2, kind: input, shape index: {}]   ;;  %s1026_s3 = inlined_call_operand.vmem [shape: f32[16,128], index: 3, kind: input, shape index: {}]   ;;  %s1027_s4 = inlined_call_operand.hbm [shape: f32[2,16,128], index: 4, kind: output, shape index: {}]  }
   0x1   :  { %11 = vsyncpa [#allocation5 + $0x1], 0  ;;  %s836_s15 = smov 0   ;;  %s838_s16 = smov 0  }
   0x2   :  { %s840_s17 = smov 0   ;;  %s842_s18 = smov 0  }
   0x3   :  { %s844_s19 = smov 0   ;;  %s846_s20 = smov 0  }
   0x4 LB: > { %s575_s21 = sadd.s32 4294967295, %s803_s20   ;;  %s576_s22 = sadd.s32 4294967294, %s803_s20   ;;  %s803_s20 = sphi %s846_s20, %s17_s20   ;;  %s799_s19 = sphi %s844_s19, %s1034_s19   ;;  %s795_s18 = sphi %s842_s18, %s1033_s18   ;;  %s791_s17 = sphi %s840_s17, %s1032_s17   ;;  %s787_s16 = sphi %s838_s16, %s1031_s16   ;;  %s783_s15 = sphi %s836_s15, %s1030_s15  }
   0x5   : > { %s29_s23 = sadd.s32 1, %s799_s19  ;;  %s127_s24 = sadd.s32 1, %s791_s17 }
   0x6   : > { %p31_p0 = scmp.ge.s32.totalorder %s29_s23, 2  ;;  %p137_p1 = scmp.ne.s32.totalorder %s791_s17, %s787_s16 }
   0x7   : > { %p138_p2 = scmp.eq.s32.totalorder %s575_s21, 1  ;;  %p143_p3 = scmp.ne.s32.totalorder %s787_s16, %s783_s15 }
   0x8   : > { %s1036_s23 = smov (%p31_p0, %s29_s23), 0  ;;  %p144_p5 = scmp.eq.s32.totalorder %s576_s22, 1 }
   0x9   : > { %p876_p4 = por %p138_p2, %p137_p1  ;;  %s124_s26 = ssub.s32 %s799_s19, %s1036_s23 }
   0xa   : > { %p579_p6 = scmp.ge.s32.totalorder %s803_s20, 1  ;;  %p125_p7 = scmp.eq.s32.totalorder %s124_s26, 0 }
   0xb   : > { %p883_p8 = por %p144_p5, %p143_p3  ;;  %p182_p9 = scmp.lt.s32.totalorder %s803_s20, 3 }
   0xc   : > { %s889_s28 = scalar_select %p125_p7, %s791_s17, %s127_s24  }
   0xd   : > { %p183_p10 = pnand %p579_p6, %p182_p9 }
   0xe   : > { %p211_p11 = scmp.lt.s32.totalorder (!%p183_p10), %s795_s18, 1  ;;  %v805_v0 = vmov (!%p183_p10), 0.0   ;;  %vm806_vm0 = vmmov (!%p183_p10), 0   ;;  %v231_v1 = vld [vmem:[%s1025_s2] sm:$0xff] (!%p183_p10)  ;;  %v807_v2 = vmov (!%p183_p10), 0   ;;  %v232_v3 = vld [vmem:[%s1025_s2 + $0x8] sm:$0xff] (!%p183_p10) }
   0xf   : > { %186 = sbr.rel (%p183_p10) target bundleno = 833 (0x341), region = 36  ;;  %610 = vmatprep.subr.bf16.mxu0 (!%p183_p10), %v805_v0  ;;  %626 = vmatprep.mubr.msk.bf16.mxu0 (!%p183_p10), %vm806_vm0, %v805_v0  ;;  %v712_v28 = vld [vmem:[%s1024_s1] sm:$0xff] (!%p183_p10)   ;;  %vm316_vm1 = vcmask (!%p183_p10), 64512   ;;  %vm226_vm2 = vcmask (!%p183_p10), 7168   ;;  %s208_s26 = sand.u32 (!%p183_p10), 1, %s787_s16  }
  0x10   : > { %710 = vset.pattern.permute.xlu0 (!%p183_p10), %v807_v2  ;;  %630 = vmatprep.subr.bf16.mxu1 (!%p183_p10), %v805_v0  ;;  %227 = vst.msk [vmem:[#allocation3] sm:$0xff] (!%p183_p10), %vm226_vm2, %v805_v0  ;;  %228 = vst.msk [vmem:[#allocation3 + $0x8] sm:$0xff] (!%p183_p10), %vm226_vm2, %v805_v0  ;;  %s580_s29 = sshll.u32 (!%p183_p10), %s208_s26, 4  ;;  %s591_s30 = sshll.u32 (!%p183_p10), %s795_s18, 8 }
  0x11   : > { %259 = vperm.xlu0 (!%p183_p10), %710, %v231_v1   ;;  %646 = vmatprep.mubr.msk.bf16.mxu1 (!%p183_p10), %vm806_vm0, %v805_v0  ;;  %s973_s9 = scalar_lea.hbm (!%p183_p10), %s1027_s4, %s591_s30 }
  0x12   : > { %711 = vset.pattern.permute.xlu1 (!%p183_p10), %v807_v2 }
  0x15   : > { %264 = vperm.xlu0 (!%p183_p10), %710, %v232_v3  }
  0x16   : > { %s212_s5 = scalar_select %p211_p11, %s795_s18, 1 }
  0x17   : > { %s977_s18 = scalar_lea.sflag [#allocation5], %s208_s26 }
  0x18   : > { %s590_s6 = sshll.u32 %s212_s5, 7  ;;  %s210_s5 = scalar_lea.vmem [#allocation4], %s580_s29 }
  0x19   : > { %s906_s11 = scalar_lea.vmem %s1023_s0, %s590_s6  ;;  %s499_s6 = sshll.u32 %s210_s5, 4  ;;  %s975_s6 = int_to_ptr.vmem [resolvable:$true] %s499_s6 }
  0x1a   : > { %v233_v4 = vld [vmem:[%s906_s11] sm:$0xff]  ;;  %v234_v5 = vld [vmem:[%s906_s11 + $0x8] sm:$0xff]  ;;  %v235_v6 = vld [vmem:[%s906_s11 + $0x10] sm:$0xff]  ;;  %s725_s10 = scalar_lea.vmem %s975_s6, 256 }
  0x1b   : > { %v249_v7 = vpack.c.bf16 %v234_v5, %v233_v4  ;;  %v236_v8 = vld [vmem:[%s906_s11 + $0x18] sm:$0xff]  ;;  %v237_v10 = vld [vmem:[%s906_s11 + $0x20] sm:$0xff]  ;;  %v238_v11 = vld [vmem:[%s906_s11 + $0x28] sm:$0xff]  ;;  %p726_p12 = scmp.ne.s32.totalorder %s975_s6, %s725_s10 }
  0x1c   : > { %v250_v9 = vpack.c.bf16 %v236_v8, %v235_v6  ;;  %v251_v12 = vpack.c.bf16 %v238_v11, %v237_v10  ;;  %v239_v13 = vld [vmem:[%s906_s11 + $0x30] sm:$0xff]  ;;  %v240_v14 = vld [vmem:[%s906_s11 + $0x38] sm:$0xff]  ;;  %v241_v16 = vld [vmem:[%s906_s11 + $0x40] sm:$0xff] }
  0x1d   : > { %611 = vmatpush3.bf16.msra.mxu0 %v249_v7  ;;  %v252_v15 = vpack.c.bf16 %v240_v14, %v239_v13  ;;  %v242_v17 = vld [vmem:[%s906_s11 + $0x48] sm:$0xff]  ;;  %v243_v19 = vld [vmem:[%s906_s11 + $0x50] sm:$0xff]  ;;  %v244_v20 = vld [vmem:[%s906_s11 + $0x58] sm:$0xff]  ;;  %v352_v29 = vsel %vm316_vm1, %v249_v7, 0  ;;  %p727_p13 = pnand %p726_p12, %p876_p4 }
  0x1e   : > { %612 = vmatprep.subr.bf16.mxu0 %v805_v0  ;;  %v253_v18 = vpack.c.bf16 %v242_v17, %v241_v16  ;;  %v254_v21 = vpack.c.bf16 %v244_v20, %v243_v19  ;;  %v245_v22 = vld [vmem:[%s906_s11 + $0x60] sm:$0xff]  ;;  %v246_v23 = vld [vmem:[%s906_s11 + $0x68] sm:$0xff]  ;;  %v247_v25 = vld [vmem:[%s906_s11 + $0x70] sm:$0xff]  ;;  %631 = vmatpush3.bf16.xpose.msra.mxu1 %v352_v29  ;;  %v355_v30 = vsel %vm316_vm1, %v250_v9, 0  ;;  %v358_v31 = vsel %vm316_vm1, %v251_v12, 0 }
  0x1f   : > { %v255_v24 = vpack.c.bf16 %v246_v23, %v245_v22  ;;  %v248_v26 = vld [vmem:[%s906_s11 + $0x78] sm:$0xff]  ;;  %632 = vmatprep.subr.bf16.mxu1 %v805_v0  ;;  %v361_v32 = vsel %vm316_vm1, %v252_v15, 0  ;;  %v420_v13 = vld [vmem:[#allocation3] sm:$0xff]  ;;  %v421_v16 = vld [vmem:[#allocation3 + $0x8] sm:$0xff]  ;;  %p728_p0 = pneg %p727_p13  ;;  %s808_s11 = smov [#allocation4]  }
  0x20   : > { %v256_v27 = vpack.c.bf16 %v248_v26, %v247_v25  ;;  %v364_v33 = vsel %vm316_vm1, %v253_v18, 0  ;;  %v367_v34 = vsel %vm316_vm1, %v254_v21, 0  ;;  %v436_v25 = vld [vmem:[%s1026_s3] sm:$0xff]  ;;  %s729_s12 = sshll.u32 %s808_s11, 4  ;;  %s730_s12 = int_to_ptr.vmem [resolvable:$false] %s729_s12 }
  0x21   : > { %613 = vmatpush3.bf16.msra.mxu0 %v250_v9  ;;  %v370_v35 = vsel %vm316_vm1, %v255_v24, 0  ;;  %s731_s13 = scalar_lea.vmem %s730_s12, 512  ;;  %p732_p1 = scmp.lt.s32.totalorder %s975_s6, %s730_s12 }
  0x22   : > { %614 = vmatprep.subr.bf16.mxu0 %v805_v0  ;;  %v373_v36 = vsel %vm316_vm1, %v256_v27, 0  ;;  %p733_p2 = scmp.lt.s32.totalorder %s731_s13, %s725_s10 }
  0x24   : > { %p734_p3 = por %p733_p2, %p732_p1 }
  0x25   : > { %615 = vmatpush3.bf16.msra.mxu0 %v251_v12 }
  0x26   : > { %616 = vmatprep.subr.bf16.mxu0 %v805_v0  ;;  %633 = vmatpush3.bf16.xpose.msra.mxu1 %v355_v30  ;;  %p735_p5 = pnand %p734_p3, %p728_p0 }
  0x27   : > { %634 = vmatprep.subr.bf16.mxu1 %v805_v0 }
  0x29   : > { %617 = vmatpush3.bf16.msra.mxu0 %v252_v15 }
  0x2a   : > { %618 = vmatprep.subr.bf16.mxu0 %v805_v0 }
  0x2d   : > { %619 = vmatpush3.bf16.msra.mxu0 %v253_v18 }
  0x2e   : > { %620 = vmatprep.subr.bf16.mxu0 %v805_v0  ;;  %635 = vmatpush3.bf16.xpose.msra.mxu1 %v358_v31 }
  0x2f   : > { %636 = vmatprep.subr.bf16.mxu1 %v805_v0 }
  0x31   : > { %621 = vmatpush3.bf16.msra.mxu0 %v254_v21 }
  0x32   : > { %622 = vmatprep.subr.bf16.mxu0 %v805_v0 }
  0x35   : > { %623 = vmatpush3.bf16.msra.mxu0 %v255_v24 }
  0x36   : > { %624 = vmatprep.subr.bf16.mxu0 %v805_v0  ;;  %637 = vmatpush3.bf16.xpose.msra.mxu1 %v361_v32 }
  0x37   : > { %638 = vmatprep.subr.bf16.mxu1 %v805_v0 }
  0x39   : > { %625 = vmatpush3.bf16.msra.mxu0 %v256_v27 }
  0x3c   : > { %627 = vmatmul.mubr.bf16.vlgmr.msra.gmra.mrb[0].mxu0 %v712_v28  ;;  %v437_v28 = vld [vmem:[%s1026_s3 + $0x8] sm:$0xff] }
  0x3e   : > { %639 = vmatpush3.bf16.xpose.msra.mxu1 %v364_v33 }
  0x3f   : > { %640 = vmatprep.subr.bf16.mxu1 %v805_v0 }
  0x46   : > { %641 = vmatpush3.bf16.xpose.msra.mxu1 %v367_v34 }
  0x47   : > { %642 = vmatprep.subr.bf16.mxu1 %v805_v0 }
  0x4e   : > { %643 = vmatpush3.bf16.xpose.msra.mxu1 %v370_v35 }
  0x4f   : > { %644 = vmatprep.subr.bf16.mxu1 %v805_v0 }
  0x56   : > { %645 = vmatpush3.bf16.xpose.msra.mxu1 %v373_v36 }
  0x90   : > { %v260_v37 = vpop.permute.xlu0 %259 }
  0x94   : > { %v265_v41 = vpop.permute.xlu0 %264 }
 0x10f   : > { %v307_v38 = vpop.f32.mrb[0].mxu0 }
 0x110   : > { %v308_v39 = vadd.f32 %v307_v38, %v260_v37  ;;  %v628_v40 = vpop.f32.mrb[1].mxu0 }
 0x111   : > { %v310_v42 = vpop.f32.mrb[2].mxu0 }
 0x112   : > { %v314_v43 = vmax.f32 %v308_v39, 0.0  ;;  %v311_v44 = vadd.f32 %v310_v42, %v265_v41  ;;  %v629_v45 = vpop.f32.mrb[3].mxu0 }
 0x114   : > { %v315_v46 = vmax.f32 %v311_v44, 0.0  ;;  %v317_v47 = vsel %vm316_vm1, %v314_v43, -inf }
 0x116   : > { %v318_v48 = vsel %vm316_vm1, %v315_v46, -inf }
 0x117   : > { %v319_v49 = vmax.f32 %v317_v47, %v318_v48 }
 0x119   : > { %v320_v50 = vrot.slane %v319_v49, 4 }
 0x11b   : > { %v321_v51 = vmax.f32 %v319_v49, %v320_v50 }
 0x11d   : > { %v322_v52 = vrot.slane %v321_v51, 2 }
 0x11f   : > { %v323_v53 = vmax.f32 %v321_v51, %v322_v52 }
 0x121   : > { %v324_v54 = vrot.slane %v323_v53, 1 }
 0x123   : > { %v325_v55 = vmax.f32 %v323_v53, %v324_v54 }
 0x125   : > { %v326_v56 = vsub.f32 %v314_v43, %v325_v55  ;;  %v327_v57 = vsub.f32 %v315_v46, %v325_v55 }
 0x127   : > { %v328_v58 = vmul.f32 1.442695, %v326_v56  ;;  %v330_v59 = vmul.f32 1.442695, %v327_v57 }
 0x129   : > { %713 = vpow2.f32 %v328_v58 }
 0x12a   : > { %715 = vpow2.f32 %v330_v59 }
 0x133   : > { %v714_v60 = vpop.eup %713 }
 0x134   : > { %v716_v61 = vpop.eup %715  ;;  %v332_v62 = vsel %vm316_vm1, %v714_v60, 0.0 }
 0x135   : > { %v333_v63 = vsel %vm316_vm1, %v716_v61, 0.0 }
 0x136   : > { %v334_v0 = vadd.f32 %v333_v63, %v332_v62 }
 0x138   : > { %v335_v1 = vrot.slane %v334_v0, 4 }
 0x13a   : > { %v336_v2 = vadd.f32 %v335_v1, %v334_v0 }
 0x13c   : > { %v337_v3 = vrot.slane %v336_v2, 2 }
 0x13e   : > { %v338_v4 = vadd.f32 %v337_v3, %v336_v2 }
 0x140   : > { %v339_v5 = vrot.slane %v338_v4, 1 }
 0x142   : > { %v340_v6 = vadd.f32 %v339_v5, %v338_v4 }
 0x144   : > { %717 = vrcp.f32 %v340_v6 }
 0x14e   : > { %v718_v7 = vpop.eup %717 }
 0x14f   : > { %v343_v8 = vmul.f32 %v718_v7, %v714_v60  ;;  %v344_v9 = vmul.f32 %v718_v7, %v716_v61 }
 0x151   : > { %v422_v10 = vsel %vm316_vm1, %v343_v8, 0.0  ;;  %v347_v11 = vpack.c.bf16 %v344_v9, %v343_v8  ;;  %v425_v12 = vsel %vm316_vm1, %v344_v9, 0.0 }
 0x152   : > { %423 = vadd.xlane.f32.xlu1 %v422_v10 }
 0x153   : > { %647 = vmatmul.mubr.msk.bf16.vlgmr.msra.gmra.mrb[0].mxu1 %vm316_vm1, %v347_v11 }
 0x156   : > { %426 = vadd.xlane.f32.xlu1 %v425_v12 }
 0x1df   : > { %v424_v14 = vpop.xlane.xlu1 %423 }
 0x1e0   : > { %v428_v15 = vadd.f32 %v424_v14, %v420_v13 }
 0x1e2   : > { %431 = vst.msk [vmem:[#allocation3] sm:$0xff] %vm226_vm2, %v428_v15 }
 0x1e3   : > { %v427_v17 = vpop.xlane.xlu1 %426 }
 0x1e4   : > { %v429_v18 = vadd.f32 %v427_v17, %v421_v16 }
 0x1e6   : > { %432 = vst.msk [vmem:[#allocation3 + $0x8] sm:$0xff] %vm226_vm2, %v429_v18 }
 0x1e9   : > { %v440_v19 = vld [vmem:[#allocation3] sm:$0xff] }
 0x1ea   : > { %444 = vperm.xlu0 %710, %v440_v19  }
 0x1ed   : > { %v441_v20 = vld [vmem:[#allocation3 + $0x8] sm:$0xff] }
 0x1ee   : > { %449 = vperm.xlu1 %711, %v441_v20  }
 0x226   : > { %v409_v21 = vpop.f32.mrb[0].mxu1 }
 0x227   : > { %v648_v22 = vpop.f32.mrb[1].mxu1 }
 0x228   : > { %v412_v23 = vpop.f32.mrb[2].mxu1 }
 0x229   : > { %v649_v24 = vpop.f32.mrb[3].mxu1 }
 0x269   : > { %v445_v26 = vpop.permute.xlu0 %444 }
 0x26a   : > { %v452_v27 = vmul.f32 %v445_v26, %v436_v25 }
 0x26c   : > { %v454_v29 = vsub.f32 %v409_v21, %v452_v27 }
 0x26d   : > { %v450_v30 = vpop.permute.xlu1 %449 }
 0x26e   : > { %v453_v31 = vmul.f32 %v450_v30, %v437_v28  ;;  %v456_v32 = vmul.f32 %v454_v29, %v454_v29 }
 0x270   : > { %v455_v33 = vsub.f32 %v412_v23, %v453_v31  ;;  %458 = vadd.xlane.f32.xlu0 %v456_v32 }
 0x272   : > { %v457_v34 = vmul.f32 %v455_v33, %v455_v33 }
 0x274   : > { %460 = vadd.xlane.f32.xlu1 %v457_v34 }
 0x2fd   : > { %v459_v35 = vpop.xlane.xlu0 %458 }
 0x2fe   : > { %v462_v36 = vmax.f32 %v459_v35, 1e-24 }
 0x300   : > { %719 = vrsqrt.f32 %v462_v36 }
 0x301   : > { %v461_v37 = vpop.xlane.xlu1 %460 }
 0x302   : > { %v463_v38 = vmax.f32 %v461_v37, 1e-24 }
 0x304   : > { %721 = vrsqrt.f32 %v463_v38 }
 0x30a   : > { %v720_v39 = vpop.eup %719 }
 0x30b   : > { %v466_v40 = vmul.f32 %v720_v39, %v459_v35 }
 0x30d   : > { %v468_v43 = vmul.f32 %v720_v39, %v466_v40 }
 0x30e   : > { %v722_v41 = vpop.eup %721 }
 0x30f   : > { %v467_v42 = vmul.f32 %v722_v41, %v461_v37 }
 0x311   : > { %v469_v44 = vmul.f32 %v722_v41, %v467_v42 }
 0x313   : > { %v470_v45 = vadd.f32 %v469_v44, %v468_v43 }
 0x315   : > { %v471_v46 = vrot.slane %v470_v45, 4 }
 0x317   : > { %v472_v47 = vadd.f32 %v471_v46, %v470_v45 }
 0x319   : > { %v473_v48 = vrot.slane %v472_v47, 2 }
 0x31b   : > { %v474_v49 = vadd.f32 %v473_v48, %v472_v47 }
 0x31d   : > { %v475_v50 = vrot.slane %v474_v49, 1 }
 0x31f   : > { %v476_v51 = vadd.f32 %v475_v50, %v474_v49 }
 0x321   : > { %v477_v52 = vmax.f32 %v476_v51, 1e-24 }
 0x323   : > { %723 = vrsqrt.f32 %v477_v52 }
 0x32d   : > { %v724_v53 = vpop.eup %723 }
 0x32e   : > { %v479_v54 = vmul.f32 %v724_v53, %v720_v39  ;;  %v480_v55 = vmul.f32 %v724_v53, %v722_v41 }
 0x330   : > { %v481_v56 = vmul.f32 %v479_v54, %v454_v29  ;;  %v482_v57 = vmul.f32 %v480_v55, %v455_v33 }
 0x332   : > { %483 = vst [vmem:[%s210_s5] sm:$0xff] %v481_v56  ;;  %484 = vst [vmem:[%s210_s5 + $0x8] sm:$0xff] %v482_v57 }
 0x333   : > { %738 = shalt.err (!%p735_p5)
}
 0x334   : > { %s739_s14 = scalar_lea.hbm %s973_s9, 256  ;;  %s743_s24 = scalar_lea.hbm %s1027_s4, 512 }
 0x335   : > { %p740_p6 = scmp.ne.s32.totalorder %s973_s9, %s739_s14  ;;  %p744_p10 = scmp.lt.u32.totalorder %s973_s9, %s1027_s4 }
 0x336   : > { %p745_p11 = scmp.lt.u32.totalorder %s743_s24, %s739_s14  ;;  %p747_p13 = scmp.lt.u32.totalorder %s739_s14, %s973_s9 }
 0x337   : > { %p741_p7 = pnand %p740_p6, %p876_p4 }
 0x338   : > { %p746_p12 = por %p745_p11, %p744_p10 }
 0x339   : > { %p742_p9 = pneg %p741_p7 }
 0x33a   : > { %p748_p0 = por %p747_p13, %p746_p12 }
 0x33c   : > { %p749_p1 = pnand %p748_p0, %p742_p9 }
 0x33e   : > { %752 = shalt.err (!%p749_p1)
}
 0x33f   : > { %s809_s30 = smov 128   ;;  %s810_s5 = smov 8  }
 0x340   : > { %650 = dma.vmem_to_hbm [thread:$0]  (%p876_p4), %s975_s6, 256, %s973_s9, %s977_s18, %s809_s30, %s809_s30, %s810_s5  }
 0x341 PF: > { %p656_p2 = scmp.ge.s32.totalorder %s803_s20, 2  ;;  %s514_s7 = sand.u32 1, %s783_s15  }
 0x342   : > { %s515_s8 = scalar_lea.sflag [#allocation5], %s514_s7 }
 0x343   : > { %p653_p3 = pnand %p656_p2, %p883_p8 }
 0x345   : > { %778 = dma.done.wait (!%p653_p3), %s515_s8, 256  }
 0x346   : > { %780 = vsyncadd (!%p653_p3), %s515_s8, 4294967040  ;;  %s17_s20 = sadd.s32 1, %s803_s20   ;;  %s1030_s15 = smov %s787_s16 }
 0x347   : > { %p14_p5 = scmp.ge.s32.totalorder %s17_s20, 4   ;;  %s1031_s16 = smov %s791_s17 }
 0x348   : > { %s1032_s17 = smov %s889_s28  ;;  %s1033_s18 = smov %s799_s19 }
 0x349   : > { %s1034_s19 = smov %s1036_s23  ;;  %16 = sbr.rel (!%p14_p5) target bundleno = 4 (0x4), region = 79 }
 0x350   :  { %520 = vsyncpa [#allocation5], 1 }
 0x351   :  { %522 = vsyncpa [#allocation5 + $0x1], 1 }

</bundles_post_ra>
